<compile_context>
chip_gen: v6e
topology: v6e:2x2x1
jax: 0.10.0
libtpu: 0.0.40
codegen_flags: <defaults>
</compile_context>

<pallas_src>
import math
import jax
import jax.numpy as jnp
from jax.experimental import pallas as pl
from jax.experimental.pallas import tpu as pltpu


def _round_up(v, m):
    return ((v + m - 1) // m) * m


# ---------------------------------------------------------------------------
# Kernel bodies. The K axis is the last grid axis and the output index_map
# ignores it, so the output tile stays resident in VMEM across K.
# ---------------------------------------------------------------------------
def _kernel_f32_bias(x_ref, w_ref, b_ref, o_ref):
    k = pl.program_id(2)

    @pl.when(k == 0)
    def _():
        o_ref[...] = jnp.zeros_like(o_ref)

    o_ref[...] += jnp.dot(x_ref[...], w_ref[...],
                          preferred_element_type=jnp.float32)

    @pl.when(k == pl.num_programs(2) - 1)
    def _():
        o_ref[...] += b_ref[...]          # (1, tn) broadcast over rows


def _kernel_f32_nobias(x_ref, w_ref, o_ref):
    k = pl.program_id(2)

    @pl.when(k == 0)
    def _():
        o_ref[...] = jnp.zeros_like(o_ref)

    o_ref[...] += jnp.dot(x_ref[...], w_ref[...],
                          preferred_element_type=jnp.float32)


def _kernel_acc_bias(x_ref, w_ref, b_ref, o_ref, acc_ref):
    k = pl.program_id(2)

    @pl.when(k == 0)
    def _():
        acc_ref[...] = jnp.zeros_like(acc_ref)

    acc_ref[...] += jnp.dot(x_ref[...], w_ref[...],
                            preferred_element_type=jnp.float32)

    @pl.when(k == pl.num_programs(2) - 1)
    def _():
        o_ref[...] = (acc_ref[...] + b_ref[...]).astype(o_ref.dtype)


def _kernel_acc_nobias(x_ref, w_ref, o_ref, acc_ref):
    k = pl.program_id(2)

    @pl.when(k == 0)
    def _():
        acc_ref[...] = jnp.zeros_like(acc_ref)

    acc_ref[...] += jnp.dot(x_ref[...], w_ref[...],
                            preferred_element_type=jnp.float32)

    @pl.when(k == pl.num_programs(2) - 1)
    def _():
        o_ref[...] = acc_ref[...].astype(o_ref.dtype)


# ---------------------------------------------------------------------------
# Tile selection.
# ---------------------------------------------------------------------------
_SINGLE_BLOCK_ELEMS = 1 << 20   # ~4 MiB of f32 operands -> one grid step


def _choose_tiles(M, N, K):
    # Tiny problems: one grid step, full-array blocks — removes all per-step
    # pipeline overhead (~0.35us / step) and all padding.
    if M * K + K * N + M * N <= _SINGLE_BLOCK_ELEMS:
        return M, N, K
    # Large problems: MXU-friendly tiles. f32, double-buffered:
    # 2*(256*1024 + 1024*512)*4 + 256*512*4 ~= 6.5 MiB  (fits v7x 32 MiB scoped).
    tm = min(_round_up(M, 8), 256)
    tn = min(_round_up(N, 128), 512)
    tk = min(_round_up(K, 128), 1024)
    return tm, tn, tk


# ---------------------------------------------------------------------------
# Public wrapper: forward of MAPDense.
# ---------------------------------------------------------------------------
def map_dense(x, weight, bias=None, *, tm=None, tn=None, tk=None):
    """MAPDense.forward: x.mm(weight) (+ bias if provided)."""
    M, K = x.shape
    K2, N = weight.shape
    assert K == K2, (K, K2)
    out_dtype = x.dtype

    atm, atn, atk = _choose_tiles(M, N, K)
    tm = atm if tm is None else tm
    tn = atn if tn is None else tn
    tk = atk if tk is None else tk

    # Zero-pad to tile multiples (matmul-neutral); result is sliced back.
    Mp, Np, Kp = _round_up(M, tm), _round_up(N, tn), _round_up(K, tk)
    if (Mp, Kp) != (M, K):
        x = jnp.pad(x, ((0, Mp - M), (0, Kp - K)))
    if (Kp, Np) != (K, N):
        weight = jnp.pad(weight, ((0, Kp - K), (0, Np - N)))

    has_bias = bias is not None
    acc_in_out = jnp.dtype(out_dtype) == jnp.float32   # f32 out -> accumulate in o_ref

    grid = (Mp // tm, Np // tn, Kp // tk)

    in_specs = [
        pl.BlockSpec((tm, tk), lambda i, j, k: (i, k)),   # x tile
        pl.BlockSpec((tk, tn), lambda i, j, k: (k, j)),   # W tile
    ]
    operands = [x, weight]
    if has_bias:
        b2 = bias.reshape(1, N).astype(jnp.float32)
        if Np != N:
            b2 = jnp.pad(b2, ((0, 0), (0, Np - N)))
        in_specs.append(pl.BlockSpec((1, tn), lambda i, j, k: (0, j)))
        operands.append(b2)

    if acc_in_out:
        kernel = _kernel_f32_bias if has_bias else _kernel_f32_nobias
        scratch_shapes = []
    else:
        kernel = _kernel_acc_bias if has_bias else _kernel_acc_nobias
        scratch_shapes = [pltpu.VMEM((tm, tn), jnp.float32)]

    itemsize = jnp.dtype(out_dtype).itemsize
    cost = pl.CostEstimate(
        flops=2 * M * N * K,
        transcendentals=0,
        bytes_accessed=(M * K + K * N + M * N + (N if has_bias else 0)) * itemsize,
    )

    out = pl.pallas_call(
        kernel,
        out_shape=jax.ShapeDtypeStruct((Mp, Np), out_dtype),
        grid_spec=pltpu.PrefetchScalarGridSpec(
            num_scalar_prefetch=0,
            grid=grid,
            in_specs=in_specs,
            out_specs=pl.BlockSpec((tm, tn), lambda i, j, k: (i, j)),
            scratch_shapes=scratch_shapes,
        ),
        compiler_params=pltpu.CompilerParams(
            dimension_semantics=("parallel", "parallel", "arbitrary"),
        ),
        cost_estimate=cost,
    )(*operands)

    if (Mp, Np) != (M, N):
        out = out[:M, :N]
    return out


def init_map_dense_params(key, in_features, out_features, bias=True):
    """Deterministic init mimicking MAPDense.reset_parameters().

    kaiming_normal(mode='fan_out') on a (in, out) tensor in PyTorch gives
    fan_out = size(0) = in_features, std = sqrt(2 / fan_out).
    bias ~ Normal(0, 0.01).
    """
    kw, kb = jax.random.split(key)
    std_w = math.sqrt(2.0 / in_features)
    weight = std_w * jax.random.normal(kw, (in_features, out_features), jnp.float32)
    b = 0.01 * jax.random.normal(kb, (out_features,), jnp.float32) if bias else None
    return weight, b


if __name__ == "__main__":
    key = jax.random.PRNGKey(0)
    k_x, k_p, k_x2, k_p2 = jax.random.split(key, 4)

    # 1) Small shapes (single-block fast path), with bias.
    batch, in_features, out_features = 16, 256, 128
    x = jax.random.normal(k_x, (batch, in_features), jnp.float32)
    weight, bias = init_map_dense_params(k_p, in_features, out_features, bias=True)

    out = jax.block_until_ready(map_dense(x, weight, bias))
    ref = x @ weight + bias[None, :]
    assert out.shape == (batch, out_features)
    assert jnp.allclose(out, ref, atol=1e-4, rtol=1e-4)

    # 2) Same shapes, bias=None path (no bias operand / DMA / epilogue add).
    out_nb = jax.block_until_ready(map_dense(x, weight, None))
    assert jnp.allclose(out_nb, x @ weight, atol=1e-4, rtol=1e-4)

    # 3) Larger, non-tile-multiple shapes exercising the tiled MXU path + padding.
    M2, K2, N2 = 384, 1536, 640
    x2 = jax.random.normal(k_x2, (M2, K2), jnp.float32)
    w2, b2 = init_map_dense_params(k_p2, K2, N2, bias=True)
    out2 = jax.block_until_ready(map_dense(x2, w2, b2))
    ref2 = x2 @ w2 + b2[None, :]
    assert out2.shape == (M2, N2)
    assert jnp.allclose(out2, ref2, atol=5e-2, rtol=5e-3)

    # TODO(synk): regularization()/_reg_w() are training-time penalties, not part
    # of forward(); not implemented as a kernel.
    print("KERNEL_OK")
</pallas_src>

<mosaic_0001>
module attributes {stable_mosaic.version = 11 : i64} {
  func.func @_kernel_f32_bias(%arg0: i32, %arg1: i32, %arg2: i32, %arg3: memref<16x256xf32, #tpu.memory_space<vmem>>, %arg4: memref<256x128xf32, #tpu.memory_space<vmem>>, %arg5: memref<1x128xf32, #tpu.memory_space<vmem>>, %arg6: memref<16x128xf32, #tpu.memory_space<vmem>>) attributes {dimension_semantics = [#tpu.dimension_semantics<parallel>, #tpu.dimension_semantics<parallel>, #tpu.dimension_semantics<arbitrary>], iteration_bounds = array<i64: 1, 1, 1>, scalar_prefetch = 0 : i64, scratch_operands = 0 : i64, tpu.core_type = #tpu.core_type<tc>, window_params = [{transform_indices = @transform_0, window_bounds = array<i64: 16, 256>}, {transform_indices = @transform_1, window_bounds = array<i64: 256, 128>}, {transform_indices = @transform_2, window_bounds = array<i64: 1, 128>}, {transform_indices = @transform_3, window_bounds = array<i64: 16, 128>}]} {
    %c0_i32 = arith.constant 0 : i32
    %0 = arith.cmpi eq, %arg2, %c0_i32 : i32
    %1 = arith.extui %0 : i1 to i32
    %c0_i32_0 = arith.constant 0 : i32
    %2 = arith.cmpi ne, %1, %c0_i32_0 : i32
    scf.if %2 {
      %cst_10 = arith.constant 0.000000e+00 : f32
      %12 = vector.broadcast %cst_10 : f32 to vector<16x128xf32>
      %c0_11 = arith.constant 0 : index
      %c0_12 = arith.constant 0 : index
      %13 = vector.load %arg6[%c0_11, %c0_12] : memref<16x128xf32, #tpu.memory_space<vmem>>, vector<16x128xf32>
      tpu.vector_store %arg6[%c0_11, %c0_12], %12 {strides = array<i32>} : memref<16x128xf32, #tpu.memory_space<vmem>>, vector<16x128xf32>,
    } else {
    }
    %c0 = arith.constant 0 : index
    %c0_1 = arith.constant 0 : index
    %3 = vector.load %arg6[%c0, %c0_1] : memref<16x128xf32, #tpu.memory_space<vmem>>, vector<16x128xf32>
    %c0_2 = arith.constant 0 : index
    %c0_3 = arith.constant 0 : index
    %4 = vector.load %arg3[%c0_2, %c0_3] : memref<16x256xf32, #tpu.memory_space<vmem>>, vector<16x256xf32>
    %c0_4 = arith.constant 0 : index
    %c0_5 = arith.constant 0 : index
    %5 = vector.load %arg4[%c0_4, %c0_5] : memref<256x128xf32, #tpu.memory_space<vmem>>, vector<256x128xf32>
    %cst = arith.constant dense<0.000000e+00> : vector<16x128xf32>
    %6 = tpu.matmul %4, %5, %cst {dimension_numbers = #tpu.dot_dimension_numbers<[1], [0], [0], [1], [0, 0, 1, 1], [], []>} : vector<16x256xf32>, vector<256x128xf32>, vector<16x128xf32> -> vector<16x128xf32>
    %7 = arith.addf %3, %6 : vector<16x128xf32>
    %c0_6 = arith.constant 0 : index
    %c0_7 = arith.constant 0 : index
    %8 = vector.load %arg6[%c0_6, %c0_7] : memref<16x128xf32, #tpu.memory_space<vmem>>, vector<16x128xf32>
    tpu.vector_store %arg6[%c0_6, %c0_7], %7 {strides = array<i32>} : memref<16x128xf32, #tpu.memory_space<vmem>>, vector<16x128xf32>,
    %c0_i32_8 = arith.constant 0 : i32
    %9 = arith.cmpi eq, %arg2, %c0_i32_8 : i32
    %10 = arith.extui %9 : i1 to i32
    %c0_i32_9 = arith.constant 0 : i32
    %11 = arith.cmpi ne, %10, %c0_i32_9 : i32
    scf.if %11 {
      %c0_10 = arith.constant 0 : index
      %c0_11 = arith.constant 0 : index
      %12 = vector.load %arg6[%c0_10, %c0_11] : memref<16x128xf32, #tpu.memory_space<vmem>>, vector<16x128xf32>
      %c0_12 = arith.constant 0 : index
      %c0_13 = arith.constant 0 : index
      %13 = vector.load %arg5[%c0_12, %c0_13] : memref<1x128xf32, #tpu.memory_space<vmem>>, vector<1x128xf32>
      %14 = vector.broadcast %13 : vector<1x128xf32> to vector<16x128xf32>
      %15 = arith.addf %12, %14 : vector<16x128xf32>
      %c0_14 = arith.constant 0 : index
      %c0_15 = arith.constant 0 : index
      %16 = vector.load %arg6[%c0_14, %c0_15] : memref<16x128xf32, #tpu.memory_space<vmem>>, vector<16x128xf32>
      tpu.vector_store %arg6[%c0_14, %c0_15], %15 {strides = array<i32>} : memref<16x128xf32, #tpu.memory_space<vmem>>, vector<16x128xf32>,
    } else {
    }
    return
  }
  func.func @transform_0(%arg0: i32, %arg1: i32, %arg2: i32) -> (i32, i32) {
    %c0_i32 = arith.constant 0 : i32
    return %arg0, %arg2 : i32, i32
  }
  func.func @transform_1(%arg0: i32, %arg1: i32, %arg2: i32) -> (i32, i32) {
    %c0_i32 = arith.constant 0 : i32
    return %arg2, %arg1 : i32, i32
  }
  func.func @transform_2(%arg0: i32, %arg1: i32, %arg2: i32) -> (i32, i32) {
    %c0_i32 = arith.constant 0 : i32
    %c0_i32_0 = arith.constant 0 : i32
    return %c0_i32, %arg1 : i32, i32
  }
  func.func @transform_3(%arg0: i32, %arg1: i32, %arg2: i32) -> (i32, i32) {
    %c0_i32 = arith.constant 0 : i32
    return %arg0, %arg1 : i32, i32
  }
}

</mosaic_0001>

<bundles_post_ra>
// kernel: tpu_custom_call.1
= control target key start
LH: loop header
LB: loop body
LE: loop exit
PB: predicated region body
PF: predicated region fallthrough
CT: control target
= control target key end

     0   :  { %8 = vsyncpa [#allocation3], 0  ;;  %s390_s0 = inlined_call_operand.hbm [shape: f32[16,256], index: 0, kind: input, shape index: {}]   ;;  %s391_s1 = inlined_call_operand.hbm [shape: f32[256,128], index: 1, kind: input, shape index: {}]   ;;  %s392_s2 = inlined_call_operand.vmem [shape: f32[1,128], index: 2, kind: input, shape index: {}]   ;;  %s393_s3 = inlined_call_operand.hbm [shape: f32[16,128], index: 3, kind: output, shape index: {}]  }
   0x1   :  { %9 = vsyncpa [#allocation6], 0 }
   0x2   :  { %10 = vsyncpa [#allocation4], 0  ;;  %s345_s12 = smov [#allocation2]  }
   0x3   :  { %s16_s13 = sshll.u32 %s345_s12, 4  ;;  %s17_s13 = int_to_ptr.vmem [resolvable:$true] %s16_s13 }
   0x4   :  { %s287_s14 = scalar_lea.vmem %s17_s13, 512  ;;  %p292_p1 = scmp.lt.s32.totalorder %s17_s13, %s17_s13 }
   0x5   :  { %p288_p0 = scmp.ne.s32.totalorder %s17_s13, %s287_s14  ;;  %p293_p2 = scmp.lt.s32.totalorder %s287_s14, %s287_s14 }
   0x7   :  { %p294_p3 = por %p293_p2, %p292_p1 }
   0x9   :  { %p295_p4 = pnand %p294_p3, %p288_p0 }
   0xb   :  { %298 = shalt.err (!%p295_p4)
}
   0xc   :  { %s346_s15 = smov 256   ;;  %s347_s16 = smov 16  }
   0xd   :  { %22 = dma.hbm_to_vmem [thread:$0]  %s390_s0, 512, %s17_s13, [#allocation3], %s346_s15, %s346_s15, %s347_s16  }
   0xe   :  { %s348_s19 = smov [#allocation5]  }
   0xf   :  { %s28_s20 = sshll.u32 %s348_s19, 4  ;;  %s29_s20 = int_to_ptr.vmem [resolvable:$true] %s28_s20 }
  0x10   :  { %s307_s21 = scalar_lea.vmem %s29_s20, 4096  ;;  %p312_p6 = scmp.lt.s32.totalorder %s29_s20, %s29_s20 }
  0x11   :  { %p308_p5 = scmp.ne.s32.totalorder %s29_s20, %s307_s21  ;;  %p313_p7 = scmp.lt.s32.totalorder %s307_s21, %s307_s21 }
  0x13   :  { %p314_p8 = por %p313_p7, %p312_p6 }
  0x15   :  { %p315_p9 = pnand %p314_p8, %p308_p5 }
  0x17   :  { %318 = shalt.err (!%p315_p9)
}
  0x18   :  { %s349_s22 = smov 128   ;;  %s350_s23 = smov 8  }
  0x19   :  { %34 = dma.hbm_to_vmem [thread:$0]  %s391_s1, 4096, %s29_s20, [#allocation6], %s349_s22, %s349_s22, %s350_s23  }
  0x1a   :  { %339 = dma.done.wait [#allocation3], 512  }
  0x1b   :  { %340 = vsyncadd [#allocation3], 4294966784 }
  0x1c   :  { %341 = dma.done.wait [#allocation6], 4096  }
  0x1d   :  { %342 = vsyncadd [#allocation6], 4294963200  ;;  %v86_v0 = vld [vmem:[#allocation5 + $0xf8] sm:$0xff]  ;;  %v85_v2 = vld [vmem:[#allocation5 + $0xf0] sm:$0xff]  ;;  %s351_s26 = smov [#allocation7]  }
  0x1e   :  { %v70_v1 = vld [vmem:[#allocation5 + $0x78] sm:$0xff]  ;;  %201 = vmatprep.subr.mxu0 %v86_v0  ;;  %239 = vmatprep.subr.mxu1 %v86_v0  ;;  %v69_v3 = vld [vmem:[#allocation5 + $0x70] sm:$0xff]  ;;  %v84_v4 = vld [vmem:[#allocation5 + $0xe8] sm:$0xff]  ;;  %s187_s27 = sshll.u32 %s351_s26, 4  ;;  %s188_s27 = int_to_ptr.vmem [resolvable:$true] %s187_s27 }
  0x1f   :  { %202 = vmatpush3.msra.mxu0 %v70_v1  ;;  %255 = vmatpush3.msra.mxu1 %v70_v1  ;;  %v68_v5 = vld [vmem:[#allocation5 + $0x68] sm:$0xff]  ;;  %v83_v6 = vld [vmem:[#allocation5 + $0xe0] sm:$0xff]  ;;  %v82_v8 = vld [vmem:[#allocation5 + $0xd8] sm:$0xff]  ;;  %s319_s28 = scalar_lea.vmem %s188_s27, 256  ;;  %p324_p11 = scmp.lt.s32.totalorder %s188_s27, %s188_s27 }
  0x20   :  { %203 = vmatprep.subr.mxu0 %v85_v2  ;;  %240 = vmatprep.subr.mxu1 %v85_v2  ;;  %v67_v7 = vld [vmem:[#allocation5 + $0x60] sm:$0xff]  ;;  %v66_v9 = vld [vmem:[#allocation5 + $0x58] sm:$0xff]  ;;  %v81_v10 = vld [vmem:[#allocation5 + $0xd0] sm:$0xff]  ;;  %p320_p10 = scmp.ne.s32.totalorder %s188_s27, %s319_s28  ;;  %p325_p12 = scmp.lt.s32.totalorder %s319_s28, %s319_s28 }
  0x21   :  { %204 = vmatpush3.msra.mxu0 %v69_v3  ;;  %256 = vmatpush3.msra.mxu1 %v69_v3  ;;  %v65_v11 = vld [vmem:[#allocation5 + $0x50] sm:$0xff]  ;;  %v80_v12 = vld [vmem:[#allocation5 + $0xc8] sm:$0xff]  ;;  %v79_v14 = vld [vmem:[#allocation5 + $0xc0] sm:$0xff] }
  0x22   :  { %205 = vmatprep.subr.mxu0 %v84_v4  ;;  %241 = vmatprep.subr.mxu1 %v84_v4  ;;  %v64_v13 = vld [vmem:[#allocation5 + $0x48] sm:$0xff]  ;;  %v63_v15 = vld [vmem:[#allocation5 + $0x40] sm:$0xff]  ;;  %v78_v16 = vld [vmem:[#allocation5 + $0xb8] sm:$0xff]  ;;  %p326_p13 = por %p325_p12, %p324_p11 }
  0x23   :  { %206 = vmatpush3.msra.mxu0 %v68_v5  ;;  %257 = vmatpush3.msra.mxu1 %v68_v5  ;;  %v62_v17 = vld [vmem:[#allocation5 + $0x38] sm:$0xff]  ;;  %v77_v18 = vld [vmem:[#allocation5 + $0xb0] sm:$0xff]  ;;  %v76_v20 = vld [vmem:[#allocation5 + $0xa8] sm:$0xff] }
  0x24   :  { %207 = vmatprep.subr.mxu0 %v83_v6  ;;  %242 = vmatprep.subr.mxu1 %v83_v6  ;;  %v61_v19 = vld [vmem:[#allocation5 + $0x30] sm:$0xff]  ;;  %v60_v21 = vld [vmem:[#allocation5 + $0x28] sm:$0xff]  ;;  %v75_v22 = vld [vmem:[#allocation5 + $0xa0] sm:$0xff]  ;;  %p327_p0 = pnand %p326_p13, %p320_p10 }
  0x25   :  { %208 = vmatpush3.msra.mxu0 %v67_v7  ;;  %258 = vmatpush3.msra.mxu1 %v67_v7  ;;  %v59_v23 = vld [vmem:[#allocation5 + $0x20] sm:$0xff]  ;;  %v74_v24 = vld [vmem:[#allocation5 + $0x98] sm:$0xff]  ;;  %v73_v26 = vld [vmem:[#allocation5 + $0x90] sm:$0xff] }
  0x26   :  { %209 = vmatprep.subr.mxu0 %v82_v8  ;;  %243 = vmatprep.subr.mxu1 %v82_v8  ;;  %v58_v25 = vld [vmem:[#allocation5 + $0x18] sm:$0xff]  ;;  %v57_v27 = vld [vmem:[#allocation5 + $0x10] sm:$0xff]  ;;  %v72_v28 = vld [vmem:[#allocation5 + $0x88] sm:$0xff] }
  0x27   :  { %210 = vmatpush3.msra.mxu0 %v66_v9  ;;  %259 = vmatpush3.msra.mxu1 %v66_v9  ;;  %v56_v29 = vld [vmem:[#allocation5 + $0x8] sm:$0xff]  ;;  %v71_v30 = vld [vmem:[#allocation5 + $0x80] sm:$0xff]  ;;  %v54_v33 = vld [vmem:[#allocation2 + $0x18] sm:$0xff] }
  0x28   :  { %211 = vmatprep.subr.mxu0 %v81_v10  ;;  %244 = vmatprep.subr.mxu1 %v81_v10  ;;  %v55_v31 = vld [vmem:[#allocation5] sm:$0xff]  ;;  %v52_v32 = vld [vmem:[#allocation2 + $0x8] sm:$0xff]  ;;  %v53_v35 = vld [vmem:[#allocation2 + $0x10] sm:$0xff] }
  0x29   :  { %212 = vmatpush3.msra.mxu0 %v65_v11  ;;  %260 = vmatpush3.msra.mxu1 %v65_v11  ;;  %v51_v34 = vld [vmem:[#allocation2] sm:$0xff] }
  0x2a   :  { %213 = vmatprep.subr.mxu0 %v80_v12  ;;  %245 = vmatprep.subr.mxu1 %v80_v12  ;;  %v200_v42 = vld [vmem:[%s392_s2] ss:$0 sm:$0xff] }
  0x2b   :  { %214 = vmatpush3.msra.mxu0 %v64_v13  ;;  %261 = vmatpush3.msra.mxu1 %v64_v13 }
  0x2c   :  { %215 = vmatprep.subr.mxu0 %v79_v14  ;;  %246 = vmatprep.subr.mxu1 %v79_v14 }
  0x2d   :  { %216 = vmatpush3.msra.mxu0 %v63_v15  ;;  %262 = vmatpush3.msra.mxu1 %v63_v15 }
  0x2e   :  { %217 = vmatprep.subr.mxu0 %v78_v16  ;;  %247 = vmatprep.subr.mxu1 %v78_v16 }
  0x2f   :  { %218 = vmatpush3.msra.mxu0 %v62_v17  ;;  %263 = vmatpush3.msra.mxu1 %v62_v17 }
  0x30   :  { %219 = vmatprep.subr.mxu0 %v77_v18  ;;  %248 = vmatprep.subr.mxu1 %v77_v18 }
  0x31   :  { %220 = vmatpush3.msra.mxu0 %v61_v19  ;;  %264 = vmatpush3.msra.mxu1 %v61_v19 }
  0x32   :  { %221 = vmatprep.subr.mxu0 %v76_v20  ;;  %249 = vmatprep.subr.mxu1 %v76_v20 }
  0x33   :  { %222 = vmatpush3.msra.mxu0 %v60_v21  ;;  %265 = vmatpush3.msra.mxu1 %v60_v21 }
  0x34   :  { %223 = vmatprep.subr.mxu0 %v75_v22  ;;  %250 = vmatprep.subr.mxu1 %v75_v22 }
  0x35   :  { %224 = vmatpush3.msra.mxu0 %v59_v23  ;;  %266 = vmatpush3.msra.mxu1 %v59_v23 }
  0x36   :  { %225 = vmatprep.subr.mxu0 %v74_v24  ;;  %251 = vmatprep.subr.mxu1 %v74_v24 }
  0x37   :  { %226 = vmatpush3.msra.mxu0 %v58_v25  ;;  %267 = vmatpush3.msra.mxu1 %v58_v25 }
  0x38   :  { %227 = vmatprep.subr.mxu0 %v73_v26  ;;  %252 = vmatprep.subr.mxu1 %v73_v26 }
  0x39   :  { %228 = vmatpush3.msra.mxu0 %v57_v27  ;;  %268 = vmatpush3.msra.mxu1 %v57_v27 }
  0x3a   :  { %229 = vmatprep.subr.mxu0 %v72_v28  ;;  %253 = vmatprep.subr.mxu1 %v72_v28 }
  0x3b   :  { %230 = vmatpush3.msra.mxu0 %v56_v29  ;;  %269 = vmatpush3.msra.mxu1 %v56_v29 }
  0x3c   :  { %231 = vmatprep.subr.mxu0 %v71_v30  ;;  %254 = vmatprep.subr.mxu1 %v71_v30 }
  0x3d   :  { %232 = vmatpush3.msra.mxu0 %v55_v31  ;;  %270 = vmatpush3.msra.mxu1 %v55_v31 }
  0x3e   :  { %151 = vmatprep.mubr.f32.mxu0 %v52_v32  ;;  %156 = vmatprep.mubr.f32.mxu1 %v54_v33 }
  0x3f   :  { %152 = vmatmul.mubr.f32.vlgmr.msra.gmra.mxu0 %v51_v34  ;;  %157 = vmatmul.mubr.f32.vlgmr.msra.gmra.mxu1 %v53_v35 }
  0xff   :  { %v233_v36 = vpop.f32.mrf.mxu0  ;;  %v236_v37 = vpop.f32.mrf.mxu1 }
 0x101   :  { %v234_v38 = vpop.f32.mrf.mxu0  ;;  %v237_v39 = vpop.f32.mrf.mxu1 }
 0x102   :  { %v235_v40 = vadd.f32 %v234_v38, %v233_v36  ;;  %v238_v41 = vadd.f32 %v237_v39, %v236_v37 }
 0x104   :  { %v178_v43 = vadd.f32 %v235_v40, %v200_v42  ;;  %v179_v44 = vadd.f32 %v238_v41, %v200_v42 }
 0x106   :  { %180 = vst [vmem:[#allocation7] sm:$0xff] %v178_v43  ;;  %181 = vst [vmem:[#allocation7 + $0x8] sm:$0xff] %v179_v44 }
 0x107   :  { %330 = shalt.err (!%p327_p0)
}
 0x108   :  { %193 = dma.vmem_to_hbm [thread:$0]  %s188_s27, 256, %s393_s3, [#allocation4], %s349_s22, %s349_s22, %s350_s23  }
 0x109   :  { %343 = dma.done.wait [#allocation4], 256  }
 0x10a   :  { %344 = vsyncadd [#allocation4], 4294967040 }
 0x10b   :  { %197 = vsyncpa [#allocation3], 1 }
 0x10c   :  { %198 = vsyncpa [#allocation6], 1 }
 0x10d   :  { %199 = vsyncpa [#allocation4], 1 }

</bundles_post_ra>
